<compile_context>
chip_gen: v6e
topology: v6e:2x2x1
jax: 0.10.0
libtpu: 0.0.40
codegen_flags: <defaults>
</compile_context>

<pallas_src>
import math

import jax
import jax.numpy as jnp
from jax.experimental import pallas as pl
from jax.experimental.pallas import tpu as pltpu


def comparator_kernel(x1_ref, x2_ref, w2a_ref, w2b_ref, b2_ref,
                      w3_ref, b3_ref, o_ref):
    # x1_ref, x2_ref : [TB, 10]
    # w2a_ref, w2b_ref: [10, H]   (top / bottom halves of the fc2 weight)
    # b2_ref : [1, H]
    # w3_ref : [H, 2], b3_ref: [1, 2]
    # o_ref  : [TB, 2]

    # fc2 on the fused concat: cat([x1,x2]) @ W2 == x1 @ W2[:10] + x2 @ W2[10:]
    h = (jnp.dot(x1_ref[...], w2a_ref[...], preferred_element_type=jnp.float32)
         + jnp.dot(x2_ref[...], w2b_ref[...], preferred_element_type=jnp.float32)
         + b2_ref[...])
    h = jnp.tanh(h)                      # EUP, f32 epilogue (v5e-safe)

    # fc3 (tiny N=2 matmul; kernel is DMA-bound so MXU is fine here)
    y = jnp.dot(h, w3_ref[...], preferred_element_type=jnp.float32) + b3_ref[...]
    o_ref[...] = y.astype(o_ref.dtype)


def comparator_forward(x1, x2, w2, b2, w3, b3, *, tb=None):
    """x1, x2: [B, 10].  w2: [20, H], b2: [H], w3: [H, 2], b3: [2]."""
    B = x1.shape[0]
    H = w2.shape[1]

    # Batch tile: multiple of 8 (sublane) and VMEM-safe on v7x's 64 MiB
    # (double-buffered 2048x(10+10+2) f32 tiles are ~0.7 MiB total).
    if tb is None:
        tb = 2048
    if B <= tb:
        tb = B                       # full-extent block satisfies (8,128) rule
    num_tiles = pl.cdiv(B, tb)

    # Pre-split fc2 weight so the concat never materializes; keep biases 2D.
    w2a = w2[:10, :]
    w2b = w2[10:, :]
    b2_2d = b2.reshape(1, H)
    b3_2d = b3.reshape(1, 2)

    weight_bytes = (w2.size + b2.size + w3.size + b3.size) * 4
    cost = pl.CostEstimate(
        flops=2 * B * 20 * H + 2 * B * H * 2,
        transcendentals=B * H,
        bytes_accessed=B * (10 + 10 + 2) * 4 + weight_bytes,
    )

    out = pl.pallas_call(
        comparator_kernel,
        out_shape=jax.ShapeDtypeStruct((B, 2), x1.dtype),
        grid_spec=pl.GridSpec(
            grid=(num_tiles,),
            in_specs=[
                # batch-tiled activations (double-buffered across grid steps)
                pl.BlockSpec((tb, 10), lambda i: (i, 0)),
                pl.BlockSpec((tb, 10), lambda i: (i, 0)),
                # weights/biases: constant index_map -> DMA'd once, VMEM-resident
                pl.BlockSpec((10, H), lambda i: (0, 0)),
                pl.BlockSpec((10, H), lambda i: (0, 0)),
                pl.BlockSpec((1, H), lambda i: (0, 0)),
                pl.BlockSpec((H, 2), lambda i: (0, 0)),
                pl.BlockSpec((1, 2), lambda i: (0, 0)),
            ],
            out_specs=pl.BlockSpec((tb, 2), lambda i: (i, 0)),
        ),
        compiler_params=pltpu.CompilerParams(
            dimension_semantics=("parallel",)),
        cost_estimate=cost,
    )(x1, x2, w2a, w2b, b2_2d, w3, b3_2d)
    return out


def init_params(key, nb_hidden):
    """Deterministic PyTorch-style Linear init: U(-1/sqrt(fan_in), 1/sqrt(fan_in))."""
    k1, k2, k3, k4 = jax.random.split(key, 4)
    in2, out2 = 2 * 10, nb_hidden
    in3, out3 = nb_hidden, 2
    bound2 = 1.0 / math.sqrt(in2)
    bound3 = 1.0 / math.sqrt(in3)
    # Stored as [in, out] (transposed vs. PyTorch's [out, in]).
    w2 = jax.random.uniform(k1, (in2, out2), jnp.float32, -bound2, bound2)
    b2 = jax.random.uniform(k2, (out2,), jnp.float32, -bound2, bound2)
    w3 = jax.random.uniform(k3, (in3, out3), jnp.float32, -bound3, bound3)
    b3 = jax.random.uniform(k4, (out3,), jnp.float32, -bound3, bound3)
    return w2, b2, w3, b3


if __name__ == "__main__":
    key = jax.random.PRNGKey(0)
    k_x1, k_x2, k_p = jax.random.split(key, 3)

    B = 8
    nb_hidden = 32
    x1 = jax.random.normal(k_x1, (B, 10), jnp.float32)
    x2 = jax.random.normal(k_x2, (B, 10), jnp.float32)
    w2, b2, w3, b3 = init_params(k_p, nb_hidden)

    out = comparator_forward(x1, x2, w2, b2, w3, b3)
    jax.block_until_ready(out)

    # Reference check in plain JAX (same math as the PyTorch module).
    ref = jnp.tanh(jnp.concatenate([x1, x2], axis=1) @ w2 + b2) @ w3 + b3
    assert out.shape == (B, 2)
    assert jnp.allclose(out, ref, atol=1e-5, rtol=1e-5)

    print("KERNEL_OK")
</pallas_src>

<mosaic_0001>
module attributes {stable_mosaic.version = 11 : i64} {
  func.func @comparator_kernel(%arg0: i32, %arg1: memref<8x10xf32, #tpu.memory_space<vmem>>, %arg2: memref<8x10xf32, #tpu.memory_space<vmem>>, %arg3: memref<10x32xf32, #tpu.memory_space<vmem>>, %arg4: memref<10x32xf32, #tpu.memory_space<vmem>>, %arg5: memref<1x32xf32, #tpu.memory_space<vmem>>, %arg6: memref<32x2xf32, #tpu.memory_space<vmem>>, %arg7: memref<1x2xf32, #tpu.memory_space<vmem>>, %arg8: memref<8x2xf32, #tpu.memory_space<vmem>>) attributes {dimension_semantics = [#tpu.dimension_semantics<parallel>], iteration_bounds = array<i64: 1>, scalar_prefetch = 0 : i64, scratch_operands = 0 : i64, tpu.core_type = #tpu.core_type<tc>, window_params = [{transform_indices = @transform_0, window_bounds = array<i64: 8, 10>}, {transform_indices = @transform_1, window_bounds = array<i64: 8, 10>}, {pipeline_mode = #tpu.pipeline_mode<synchronous>, transform_indices = @transform_2, window_bounds = array<i64: 10, 32>}, {pipeline_mode = #tpu.pipeline_mode<synchronous>, transform_indices = @transform_3, window_bounds = array<i64: 10, 32>}, {pipeline_mode = #tpu.pipeline_mode<synchronous>, transform_indices = @transform_4, window_bounds = array<i64: 1, 32>}, {pipeline_mode = #tpu.pipeline_mode<synchronous>, transform_indices = @transform_5, window_bounds = array<i64: 32, 2>}, {pipeline_mode = #tpu.pipeline_mode<synchronous>, transform_indices = @transform_6, window_bounds = array<i64: 1, 2>}, {transform_indices = @transform_7, window_bounds = array<i64: 8, 2>}]} {
    %c0 = arith.constant 0 : index
    %c0_0 = arith.constant 0 : index
    %0 = vector.load %arg1[%c0, %c0_0] : memref<8x10xf32, #tpu.memory_space<vmem>>, vector<8x10xf32>
    %c0_1 = arith.constant 0 : index
    %c0_2 = arith.constant 0 : index
    %1 = vector.load %arg3[%c0_1, %c0_2] : memref<10x32xf32, #tpu.memory_space<vmem>>, vector<10x32xf32>
    %cst = arith.constant dense<0.000000e+00> : vector<8x32xf32>
    %2 = tpu.matmul %0, %1, %cst {dimension_numbers = #tpu.dot_dimension_numbers<[1], [0], [0], [1], [0, 0, 1, 1], [], []>} : vector<8x10xf32>, vector<10x32xf32>, vector<8x32xf32> -> vector<8x32xf32>
    %c0_3 = arith.constant 0 : index
    %c0_4 = arith.constant 0 : index
    %3 = vector.load %arg2[%c0_3, %c0_4] : memref<8x10xf32, #tpu.memory_space<vmem>>, vector<8x10xf32>
    %c0_5 = arith.constant 0 : index
    %c0_6 = arith.constant 0 : index
    %4 = vector.load %arg4[%c0_5, %c0_6] : memref<10x32xf32, #tpu.memory_space<vmem>>, vector<10x32xf32>
    %cst_7 = arith.constant dense<0.000000e+00> : vector<8x32xf32>
    %5 = tpu.matmul %3, %4, %cst_7 {dimension_numbers = #tpu.dot_dimension_numbers<[1], [0], [0], [1], [0, 0, 1, 1], [], []>} : vector<8x10xf32>, vector<10x32xf32>, vector<8x32xf32> -> vector<8x32xf32>
    %6 = arith.addf %2, %5 : vector<8x32xf32>
    %c0_8 = arith.constant 0 : index
    %c0_9 = arith.constant 0 : index
    %7 = vector.load %arg5[%c0_8, %c0_9] : memref<1x32xf32, #tpu.memory_space<vmem>>, vector<1x32xf32>
    %8 = vector.broadcast %7 : vector<1x32xf32> to vector<8x32xf32>
    %9 = arith.addf %6, %8 : vector<8x32xf32>
    %10 = math.tanh %9 : vector<8x32xf32>
    %c0_10 = arith.constant 0 : index
    %c0_11 = arith.constant 0 : index
    %11 = vector.load %arg6[%c0_10, %c0_11] : memref<32x2xf32, #tpu.memory_space<vmem>>, vector<32x2xf32>
    %cst_12 = arith.constant dense<0.000000e+00> : vector<8x2xf32>
    %12 = tpu.matmul %10, %11, %cst_12 {dimension_numbers = #tpu.dot_dimension_numbers<[1], [0], [0], [1], [0, 0, 1, 1], [], []>} : vector<8x32xf32>, vector<32x2xf32>, vector<8x2xf32> -> vector<8x2xf32>
    %c0_13 = arith.constant 0 : index
    %c0_14 = arith.constant 0 : index
    %13 = vector.load %arg7[%c0_13, %c0_14] : memref<1x2xf32, #tpu.memory_space<vmem>>, vector<1x2xf32>
    %14 = vector.broadcast %13 : vector<1x2xf32> to vector<8x2xf32>
    %15 = arith.addf %12, %14 : vector<8x2xf32>
    %c0_15 = arith.constant 0 : index
    %c0_16 = arith.constant 0 : index
    %16 = vector.load %arg8[%c0_15, %c0_16] : memref<8x2xf32, #tpu.memory_space<vmem>>, vector<8x2xf32>
    tpu.vector_store %arg8[%c0_15, %c0_16], %15 {strides = array<i32>} : memref<8x2xf32, #tpu.memory_space<vmem>>, vector<8x2xf32>,
    return
  }
  func.func @transform_0(%arg0: i32) -> (i32, i32) {
    %c0_i32 = arith.constant 0 : i32
    %c0_i32_0 = arith.constant 0 : i32
    return %arg0, %c0_i32 : i32, i32
  }
  func.func @transform_1(%arg0: i32) -> (i32, i32) {
    %c0_i32 = arith.constant 0 : i32
    %c0_i32_0 = arith.constant 0 : i32
    return %arg0, %c0_i32 : i32, i32
  }
  func.func @transform_2(%arg0: i32) -> (i32, i32) {
    %c0_i32 = arith.constant 0 : i32
    %c0_i32_0 = arith.constant 0 : i32
    %c0_i32_1 = arith.constant 0 : i32
    return %c0_i32, %c0_i32_0 : i32, i32
  }
  func.func @transform_3(%arg0: i32) -> (i32, i32) {
    %c0_i32 = arith.constant 0 : i32
    %c0_i32_0 = arith.constant 0 : i32
    %c0_i32_1 = arith.constant 0 : i32
    return %c0_i32, %c0_i32_0 : i32, i32
  }
  func.func @transform_4(%arg0: i32) -> (i32, i32) {
    %c0_i32 = arith.constant 0 : i32
    %c0_i32_0 = arith.constant 0 : i32
    %c0_i32_1 = arith.constant 0 : i32
    return %c0_i32, %c0_i32_0 : i32, i32
  }
  func.func @transform_5(%arg0: i32) -> (i32, i32) {
    %c0_i32 = arith.constant 0 : i32
    %c0_i32_0 = arith.constant 0 : i32
    %c0_i32_1 = arith.constant 0 : i32
    return %c0_i32, %c0_i32_0 : i32, i32
  }
  func.func @transform_6(%arg0: i32) -> (i32, i32) {
    %c0_i32 = arith.constant 0 : i32
    %c0_i32_0 = arith.constant 0 : i32
    %c0_i32_1 = arith.constant 0 : i32
    return %c0_i32, %c0_i32_0 : i32, i32
  }
  func.func @transform_7(%arg0: i32) -> (i32, i32) {
    %c0_i32 = arith.constant 0 : i32
    %c0_i32_0 = arith.constant 0 : i32
    return %arg0, %c0_i32 : i32, i32
  }
}

</mosaic_0001>

<bundles_post_ra>
// kernel: tpu_custom_call.1
= control target key start
LH: loop header
LB: loop body
LE: loop exit
PB: predicated region body
PF: predicated region fallthrough
CT: control target
= control target key end

     0   :  { %12 = vsyncpa [#allocation3], 0  ;;  %s491_s0 = inlined_call_operand.hbm [shape: f32[8,10], index: 0, kind: input, shape index: {}]   ;;  %s492_s1 = inlined_call_operand.hbm [shape: f32[8,10], index: 1, kind: input, shape index: {}]   ;;  %s493_s2 = inlined_call_operand.vmem [shape: f32[10,32], index: 2, kind: input, shape index: {}]   ;;  %s494_s3 = inlined_call_operand.vmem [shape: f32[10,32], index: 3, kind: input, shape index: {}]   ;;  %s495_s4 = inlined_call_operand.vmem [shape: f32[1,32], index: 4, kind: input, shape index: {}]   ;;  %s496_s5 = inlined_call_operand.vmem [shape: f32[32,2], index: 5, kind: input, shape index: {}]   ;;  %s497_s6 = inlined_call_operand.vmem [shape: f32[1,2], index: 6, kind: input, shape index: {}]   ;;  %s498_s7 = inlined_call_operand.vmem [shape: f32[8,2], index: 7, kind: output, shape index: {}]  }
   0x1   :  { %13 = vsyncpa [#allocation5], 0  ;;  %s405_s24 = smov [#allocation2]   ;;  %s406_s26 = smov [#allocation4]  }
   0x2   :  { %s20_s25 = sshll.u32 %s405_s24, 4  ;;  %s30_s27 = sshll.u32 %s406_s26, 4  ;;  %s21_s25 = int_to_ptr.vmem [resolvable:$true] %s20_s25  ;;  %s31_s27 = int_to_ptr.vmem [resolvable:$true] %s30_s27 }
   0x3   :  { %s369_s28 = scalar_lea.vmem %s21_s25, 128  ;;  %p374_p1 = scmp.lt.s32.totalorder %s21_s25, %s21_s25 }
   0x4   :  { %p370_p0 = scmp.ne.s32.totalorder %s21_s25, %s369_s28  ;;  %p375_p2 = scmp.lt.s32.totalorder %s369_s28, %s369_s28 }
   0x6   :  { %p376_p3 = por %p375_p2, %p374_p1 }
   0x8   :  { %p377_p4 = pnand %p376_p3, %p370_p0 }
   0xa   :  { %380 = shalt.err (!%p377_p4)
}
   0xb   :  { %23 = dma.hbm_to_vmem [thread:$0]  %s491_s0, 128, %s21_s25, [#allocation3]  }
   0xc   :  { %s389_s8 = scalar_lea.vmem %s31_s27, 128  ;;  %p394_p6 = scmp.lt.s32.totalorder %s31_s27, %s31_s27 }
   0xd   :  { %p390_p5 = scmp.ne.s32.totalorder %s31_s27, %s389_s8  ;;  %p395_p7 = scmp.lt.s32.totalorder %s389_s8, %s389_s8 }
   0xf   :  { %p396_p8 = por %p395_p7, %p394_p6 }
  0x11   :  { %p397_p9 = pnand %p396_p8, %p390_p5 }
  0x13   :  { %400 = shalt.err (!%p397_p9)
}
  0x14   :  { %33 = dma.hbm_to_vmem [thread:$0]  %s492_s1, 128, %s31_s27, [#allocation5]  }
  0x15   :  { %401 = dma.done.wait [#allocation3], 128  }
  0x16   :  { %402 = vsyncadd [#allocation3], 4294967168 }
  0x17   :  { %403 = dma.done.wait [#allocation5], 128  }
  0x18   :  { %404 = vsyncadd [#allocation5], 4294967168  ;;  %v407_v0 = vmov 0.0   ;;  %vm408_vm0 = vmmov 0   ;;  %vm60_vm1 = vcmask 1041408   ;;  %v54_v2 = vld [vmem:[%s494_s3] sm:$0xff] }
  0x19   :  { %330 = vmatprep.subr.mxu1 %v407_v0  ;;  %334 = vmatprep.mubr.msk.f32.mxu1 %vm408_vm0, %v407_v0  ;;  %v55_v1 = vld [vmem:[%s494_s3 + $0x8] sm:$0x3]  ;;  %vm56_vm2 = vcmask 80896   ;;  %v51_v5 = vld [vmem:[%s493_s2] sm:$0xff]  ;;  %v222_v7 = vld [vmem:[%s496_s5 + $0x18] sm:$0xff]  ;;  %vm230_vm3 = vcmask 261120  }
  0x1a   :  { %344 = vmatprep.subr.mxu0 %v407_v0  ;;  %352 = vmatprep.mubr.msk.f32.mxu0 %vm408_vm0, %v407_v0  ;;  %v53_v3 = vld [vmem:[#allocation4] sm:$0xff]  ;;  %v50_v6 = vld [vmem:[#allocation2] sm:$0xff]  ;;  %v221_v8 = vld [vmem:[%s496_s5 + $0x10] sm:$0xff]  ;;  %vm304_vm4 = vcmask 15360  }
  0x1b   :  { %331 = vmatpush3.msk.msra.mxu1 %vm60_vm1, %v55_v1  ;;  %v52_v4 = vld [vmem:[%s493_s2 + $0x8] sm:$0x3]  ;;  %345 = vmatpush3.msra.mxu0 %v222_v7  ;;  %v219_v10 = vld [vmem:[%s496_s5] sm:$0xff] }
  0x1c   :  { %332 = vmatprep.subr.mxu1 %v407_v0  ;;  %346 = vmatprep.subr.mxu0 %v407_v0  ;;  %v220_v9 = vld [vmem:[%s496_s5 + $0x8] sm:$0xff]  ;;  %v316_v14 = vld [vmem:[%s495_s4] ss:$0 sm:$0xff] }
  0x1d   :  { %333 = vmatpush3.msra.mxu1 %v54_v2  ;;  %347 = vmatpush3.msra.mxu0 %v221_v8  ;;  %v317_v19 = vld [vmem:[%s497_s6] ss:$0 sm:$0xff] }
  0x1e   :  { %335 = vmatmul.mubr.msk.f32.vlgmr.msra.gmra.mxu1 %vm56_vm2, %v53_v3  ;;  %337 = vmatprep.subr.mxu1 %v407_v0 }
  0x1f   :  { %338 = vmatpush3.msk.msra.mxu1 %vm60_vm1, %v52_v4  ;;  %341 = vmatprep.mubr.msk.f32.mxu1 %vm408_vm0, %v407_v0 }
  0x20   :  { %339 = vmatprep.subr.mxu1 %v407_v0  ;;  %348 = vmatprep.subr.mxu0 %v407_v0 }
  0x21   :  { %340 = vmatpush3.msra.mxu1 %v51_v5  ;;  %349 = vmatpush3.msra.mxu0 %v220_v9 }
  0x22   :  { %342 = vmatmul.mubr.msk.f32.vlgmr.msra.gmra.mxu1 %vm56_vm2, %v50_v6  ;;  %350 = vmatprep.subr.mxu0 %v407_v0 }
  0x23   :  { %351 = vmatpush3.msra.mxu0 %v219_v10 }
  0xde   :  { %v130_v11 = vpop.f32.mrf.mxu1 }
  0xe0   :  { %v336_v12 = vpop.f32.mrf.mxu1 }
  0xe2   :  { %v206_v13 = vpop.f32.mrf.mxu1 }
  0xe3   :  { %v207_v15 = vadd.f32 %v206_v13, %v130_v11 }
  0xe4   :  { %v343_v16 = vpop.f32.mrf.mxu1 }
  0xe5   :  { %v217_v17 = vadd.f32 %v316_v14, %v207_v15 }
  0xe7   :  { %359 = vtanh.f32 %v217_v17 }
  0xf4   :  { %v360_v18 = vpop.eup %359 }
  0xf5   :  { %353 = vmatmul.mubr.msk.f32.vlgmr.msra.gmra.mxu0 %vm230_vm3, %v360_v18 }
 0x1b5   :  { %v300_v20 = vpop.f32.mrf.mxu0 }
 0x1b6   :  { %v301_v21 = vadd.f32 %v317_v19, %v300_v20 }
 0x1b7   :  { %v354_v22 = vpop.f32.mrf.mxu0 }
 0x1b8   :  { %305 = vst.msk [vmem:[%s498_s7] sm:$0xff] %vm304_vm4, %v301_v21 }
 0x1b9   :  { %310 = vsyncpa [#allocation3], 1 }
 0x1ba   :  { %311 = vsyncpa [#allocation5], 1 }

</bundles_post_ra>
